<compile_context>
chip_gen: v7x
topology: tpu7x:2x2x1
jax: 0.10.0
libtpu: 0.0.40
codegen_flags: <defaults>
</compile_context>

<pallas_src>
import functools

import jax
import jax.numpy as jnp
from jax.experimental import pallas as pl
from jax.experimental.pallas import tpu as pltpu


# ---------------------------------------------------------------------------
# Kernel
# ---------------------------------------------------------------------------
def _gated_mf_attn_kernel(x_ref, mask_ref, wp_ref, bp_ref, wg_ref, bg_ref,
                          out_ref, *, Bt, L, Hp, F, attn_pooling,
                          compute_dtype, score_chunk):
    """One batch block (Bt sequences) per grid step.

    x_ref   : (Bt, L, Hp)    lane-padded input (f32), pipelined block
    mask_ref: (Bt, 1, L)     validity mask (f32), pipelined block
    wp_ref  : (Hp, F*Hp)     projector weight, factor-major, VMEM-resident
    bp_ref  : (1, F*Hp)      projector bias (f32), VMEM-resident
    wg_ref  : (2*Hp, 2*Hp)   gate weight (rows: [x rows ; multi rows],
                             cols: [gate(x half) | gate(multi half)])
    bg_ref  : (1, 2*Hp)      gate bias (f32)
    out_ref : (Bt, L, 2*Hp)  lanes [:Hp] = gate*x, lanes [Hp:] = gate*multi
    """
    f32 = jnp.float32
    cd = compute_dtype

    x = x_ref[...]                                   # (Bt, L, Hp) f32
    x3c = x.astype(cd)                               # reused: scores + encode
    x2c = x3c.reshape(Bt * L, Hp)

    # ---- pairwise mask with zeroed diagonal folded into one product -------
    m = mask_ref[...][:, 0, :]                                    # (Bt, L)
    row = jax.lax.broadcasted_iota(jnp.int32, (L, L), 0)
    col = jax.lax.broadcasted_iota(jnp.int32, (L, L), 1)
    offdiag = (row != col).astype(f32)
    mask2d = m[:, :, None] * m[:, None, :] * offdiag[None, :, :]  # (Bt, L, L)

    # ---- pooled per-factor self-attention scores ---------------------------
    # Factor chunks: the projected chunk yc lives only for its score matmul.
    self_attn = None
    fac = 0
    while fac < F:
        nf = min(score_chunk, F - fac)
        k0, k1 = fac * Hp, (fac + nf) * Hp
        yc = (jnp.dot(x2c, wp_ref[:, k0:k1].astype(cd),
                      preferred_element_type=f32)
              + bp_ref[:, k0:k1])                                 # (Bt*L, nf*Hp)
        yc = yc.reshape(Bt, L, nf * Hp).astype(cd)
        s = jnp.einsum('blh,bmh->blm', yc, yc,
                       preferred_element_type=f32)                # (Bt, L, L)
        if self_attn is None:
            self_attn = s
        elif attn_pooling == 'max':
            self_attn = jnp.maximum(self_attn, s)
        elif attn_pooling == 'min':
            self_attn = jnp.minimum(self_attn, s)
        else:                                                     # 'mean'
            self_attn = self_attn + s
        fac += nf
    if attn_pooling not in ('max', 'min'):
        self_attn = self_attn * (1.0 / F)

    # ---- fused allennlp masked_softmax (multiply-mask, renormalize), f32 ---
    # TODO(synk): for production L (512+) tile this over key blocks with an
    # online masked softmax so the (Bt, L, L) tensors never fully materialize.
    s_m = self_attn * mask2d
    z = jnp.exp(s_m - jnp.max(s_m, axis=-1, keepdims=True)) * mask2d
    denom = jnp.sum(z, axis=-1, keepdims=True) + 1e-13
    alpha = z * pl.reciprocal(denom, approx=True)                 # f32, EUP slot

    # ---- attentive encoding -------------------------------------------------
    multi = jnp.einsum('blm,bmh->blh', alpha.astype(cd), x3c,
                       preferred_element_type=f32)                # (Bt, L, Hp)
    multi2 = multi.reshape(Bt * L, Hp)

    # ---- gate ---------------------------------------------------------------
    if Hp <= 128:
        # Single K = 2*Hp = 256 matmul fills the 256-deep v6e/v7x MXU.
        xm = jnp.concatenate([x2c, multi2.astype(cd)], axis=-1)   # (Bt*L, 2Hp)
        g_logits = (jnp.dot(xm, wg_ref[...].astype(cd),
                            preferred_element_type=f32) + bg_ref[...])
    else:
        # Concat-free form: [x, multi] @ Wg == x @ Wg_x + multi @ Wg_m
        g_logits = (jnp.dot(x2c, wg_ref[:Hp, :].astype(cd),
                            preferred_element_type=f32)
                    + jnp.dot(multi2.astype(cd), wg_ref[Hp:, :].astype(cd),
                              preferred_element_type=f32)
                    + bg_ref[...])
    gate = jax.nn.sigmoid(g_logits)                               # f32

    g_x = gate[:, :Hp].reshape(Bt, L, Hp)
    g_m = gate[:, Hp:].reshape(Bt, L, Hp)
    out_ref[:, :, :Hp] = (g_x * x).astype(out_ref.dtype)
    out_ref[:, :, Hp:] = (g_m * multi).astype(out_ref.dtype)


# ---------------------------------------------------------------------------
# Sizing heuristics
# ---------------------------------------------------------------------------
def _round_up(v, m):
    return ((v + m - 1) // m) * m


def _vmem_budget_bytes():
    """Usable VMEM budget (generation-aware, conservative)."""
    try:
        cap = int(pltpu.get_tpu_info().vmem_capacity_bytes)
    except Exception:
        cap = 64 * 1024 * 1024
    return max(32 * 1024 * 1024, min(int(cap * 0.75), 112 * 1024 * 1024))


def _step_bytes(bt, L, Hp, F, score_chunk, param_bytes):
    """Rough per-grid-step VMEM estimate: double-buffered activation blocks,
    single-buffered resident weights, transient compute temporaries."""
    f32 = 4
    io = 2 * f32 * bt * L * (Hp + 2 * Hp) + 2 * f32 * bt * L      # x + out + mask
    attn = 4 * f32 * bt * L * L                                   # s / mask2d / z / alpha
    acts = f32 * bt * L * Hp * (score_chunk + 5)                  # y chunk, multi, gate, temps
    wgts = param_bytes * Hp * Hp * (F + 4) + f32 * Hp * (F + 2)
    return io + attn + acts + wgts


def _pick_batch_block(B, L, Hp, F, score_chunk, param_bytes, budget):
    if B <= 1:
        return 1
    max_bt = max(1, -(-B // 2))              # keep >= 2 grid steps (megacore)
    bt = 1
    for cand in range(1, max_bt + 1):
        if _step_bytes(cand, L, Hp, F, score_chunk, param_bytes) <= budget:
            bt = cand

    # Prefer an even number of grid steps (v7x: 2 TCs on the parallel axis),
    # but never shrink the block by more than ~2x for it.
    def nsteps(b):
        return -(-B // b)

    if nsteps(bt) > 1 and nsteps(bt) % 2 == 1:
        for cand in range(bt - 1, bt // 2, -1):
            if nsteps(cand) % 2 == 0:
                bt = cand
                break
    return bt


# ---------------------------------------------------------------------------
# Parameter preparation (one-time, hoisted out of the per-forward path)
# ---------------------------------------------------------------------------
def prepare_gated_mf_attn_params(wp, bp, wg, bg, num_factor, hidden_dim,
                                 param_dtype=jnp.bfloat16):
    """Re-layout + lane-pad the projector / gate parameters once.

    wp: (H, H*F)  projector weight (y = x @ wp + bp; output col c = h*F + fac)
    bp: (H*F,)    projector bias
    wg: (2H, 2H)  gate weight (g = [x, multi] @ wg + bg)
    bg: (2H,)     gate bias
    """
    H, F = hidden_dim, num_factor
    Hp = _round_up(H, 128)
    f32 = jnp.float32

    # projector: PyTorch column layout (c = h*F + fac) -> factor-major,
    # lane-padded layout (c' = fac*Hp + h)
    wp_k = jnp.zeros((Hp, F, Hp), f32).at[:H, :, :H].set(
        wp.astype(f32).reshape(H, H, F).transpose(0, 2, 1)
    ).reshape(Hp, F * Hp).astype(param_dtype)
    bp_k = jnp.zeros((F, Hp), f32).at[:, :H].set(
        bp.astype(f32).reshape(H, F).transpose(1, 0)).reshape(1, F * Hp)

    # gate: split rows into x rows / multi rows, lane-pad both output halves,
    # then stack rows [Wg_x ; Wg_m]
    wg_f = wg.astype(f32)
    wg_x = (jnp.zeros((Hp, 2, Hp), f32)
            .at[:H, 0, :H].set(wg_f[:H, :H])
            .at[:H, 1, :H].set(wg_f[:H, H:])).reshape(Hp, 2 * Hp)
    wg_m = (jnp.zeros((Hp, 2, Hp), f32)
            .at[:H, 0, :H].set(wg_f[H:, :H])
            .at[:H, 1, :H].set(wg_f[H:, H:])).reshape(Hp, 2 * Hp)
    wg_k = jnp.concatenate([wg_x, wg_m], axis=0).astype(param_dtype)
    bg_k = (jnp.zeros((2, Hp), f32)
            .at[0, :H].set(bg.astype(f32)[:H])
            .at[1, :H].set(bg.astype(f32)[H:])).reshape(1, 2 * Hp)

    return {"wp": wp_k, "bp": bp_k, "wg": wg_k, "bg": bg_k,
            "H": H, "Hp": Hp, "F": F}


# ---------------------------------------------------------------------------
# Forward wrapper
# ---------------------------------------------------------------------------
def gated_multifactor_self_attn_enc(x, x_mask, params, *, attn_pooling="max",
                                    batch_block=None,
                                    compute_dtype=jnp.bfloat16):
    """x: (B, L, H) float; x_mask: (B, L) in {0,1}. Returns (B, L, 2H)."""
    B, L, H = x.shape
    Hp, F = params["Hp"], params["F"]
    assert params["H"] == H
    f32 = jnp.float32

    # factor chunk width: 1 for max/min; for 'mean', sum-of-Grams equals the
    # Gram over concatenated factors, so widen K to fill the 256-deep MXU.
    score_chunk = 1 if attn_pooling in ("max", "min") else max(1, min(F, 256 // Hp))
    param_bytes = jnp.dtype(params["wp"].dtype).itemsize
    budget = _vmem_budget_bytes()

    Bt = batch_block if batch_block is not None else _pick_batch_block(
        B, L, Hp, F, score_chunk, param_bytes, budget)
    Bt = max(1, min(Bt, B))
    nb = pl.cdiv(B, Bt)
    Bp = nb * Bt

    # activation padding (skipped entirely when H and B are already aligned)
    if H == Hp and Bp == B:
        x_in = x.astype(f32)
    else:
        x_in = jnp.zeros((Bp, L, Hp), f32).at[:B, :, :H].set(x.astype(f32))
    mask3 = jnp.zeros((Bp, 1, L), f32).at[:B, 0, :].set(x_mask.astype(f32))

    kernel = functools.partial(
        _gated_mf_attn_kernel, Bt=Bt, L=L, Hp=Hp, F=F,
        attn_pooling=attn_pooling, compute_dtype=compute_dtype,
        score_chunk=score_chunk)

    # grid-invariant weights: fully VMEM-resident, single copy (no double
    # buffering across grid steps).
    vmem_resident = pl.BlockSpec(memory_space=pltpu.MemorySpace.VMEM)

    out = pl.pallas_call(
        kernel,
        out_shape=jax.ShapeDtypeStruct((Bp, L, 2 * Hp), f32),
        grid=(nb,),
        in_specs=[
            pl.BlockSpec((Bt, L, Hp), lambda b: (b, 0, 0)),   # x (pipelined)
            pl.BlockSpec((Bt, 1, L), lambda b: (b, 0, 0)),    # mask (pipelined)
            vmem_resident,                                    # Wp
            vmem_resident,                                    # bp
            vmem_resident,                                    # Wg (stacked)
            vmem_resident,                                    # bg
        ],
        out_specs=pl.BlockSpec((Bt, L, 2 * Hp), lambda b: (b, 0, 0)),
        compiler_params=pltpu.CompilerParams(
            dimension_semantics=("parallel",),
            vmem_limit_bytes=budget),
    )(x_in, mask3, params["wp"], params["bp"], params["wg"], params["bg"])

    # repack: lanes [:H] = gated x half, lanes [Hp:Hp+H] = gated multi half
    if H == Hp:
        result = out[:B] if Bp != B else out
    else:
        result = jnp.concatenate([out[:B, :, :H], out[:B, :, Hp:Hp + H]],
                                 axis=-1)
    return result.astype(x.dtype)


# ---------------------------------------------------------------------------
# Pure-JAX reference (mirrors the PyTorch forward)
# ---------------------------------------------------------------------------
def _reference(x, x_mask, wp, bp, wg, bg, F, attn_pooling="max"):
    B, L, H = x.shape
    y_multi = (x.reshape(-1, H) @ wp + bp).reshape(B, L, H, F)
    attns = jnp.stack(
        [jnp.einsum('bih,bjh->bij', y_multi[..., f], y_multi[..., f])
         for f in range(F)], axis=-1)
    if attn_pooling == 'max':
        self_attn = jnp.max(attns, axis=-1)
    elif attn_pooling == 'min':
        self_attn = jnp.min(attns, axis=-1)
    else:
        self_attn = jnp.mean(attns, axis=-1)
    mask = x_mask[:, :, None] * x_mask[:, None, :]
    mask = mask * (1.0 - jnp.eye(L, dtype=x.dtype))
    p = jax.nn.softmax(self_attn * mask, axis=-1) * mask
    alpha = p / (p.sum(-1, keepdims=True) + 1e-13)
    multi = jnp.einsum('bij,bjh->bih', alpha, x)
    joint = jnp.concatenate([x, multi], -1)
    gate = jax.nn.sigmoid(joint.reshape(-1, 2 * H) @ wg + bg).reshape(B, L, 2 * H)
    return gate * joint


if __name__ == "__main__":
    B, L, H, F = 2, 8, 32, 4

    key = jax.random.PRNGKey(0)
    kx, kp, kbp, kg, kbg = jax.random.split(key, 5)

    x = jax.random.normal(kx, (B, L, H), dtype=jnp.float32)
    # deterministic mask: batch 0 fully valid, batch 1 has trailing padding
    lens = jnp.array([L, 5], dtype=jnp.int32)
    x_mask = (jnp.arange(L)[None, :] < lens[:, None]).astype(jnp.float32)

    # projector FeedForward: H -> H*F  (linear, identity activation)
    wp = jax.random.normal(kp, (H, H * F), dtype=jnp.float32) * 0.1
    bp = jax.random.normal(kbp, (H * F,), dtype=jnp.float32) * 0.1
    # gate FeedForward: 2H -> 2H
    wg = jax.random.normal(kg, (2 * H, 2 * H), dtype=jnp.float32) * 0.1
    bg = jax.random.normal(kbg, (2 * H,), dtype=jnp.float32) * 0.1

    # --- tight f32 verification (max and mean pooling code paths) -----------
    params_f32 = prepare_gated_mf_attn_params(wp, bp, wg, bg, F, H,
                                              param_dtype=jnp.float32)
    for pooling in ("max", "mean"):
        out = gated_multifactor_self_attn_enc(
            x, x_mask, params_f32, attn_pooling=pooling,
            compute_dtype=jnp.float32)
        out = jax.block_until_ready(out)
        ref = _reference(x, x_mask, wp, bp, wg, bg, F, pooling)
        assert out.shape == (B, L, 2 * H)
        # Tolerance covers the EUP approximate reciprocal in alpha.
        assert jnp.allclose(out, ref, atol=5e-3, rtol=5e-3), \
            f"f32 mismatch vs reference ({pooling})"

    # --- default production config: bf16 weights + bf16 MXU operands --------
    # (loose smoke check; the algorithm is verified tightly in f32 above)
    params_bf16 = prepare_gated_mf_attn_params(wp, bp, wg, bg, F, H)
    out_bf16 = gated_multifactor_self_attn_enc(x, x_mask, params_bf16,
                                               attn_pooling="max")
    out_bf16 = jax.block_until_ready(out_bf16)
    ref = _reference(x, x_mask, wp, bp, wg, bg, F, "max")
    assert out_bf16.shape == (B, L, 2 * H)
    assert float(jnp.max(jnp.abs(out_bf16 - ref))) < 1e-1, \
        "bf16 path mismatch vs reference"

    print("KERNEL_OK")
</pallas_src>

<mosaic_0001>
module attributes {stable_mosaic.version = 11 : i64} {
  func.func @_gated_mf_attn_kernel(%arg0: i32, %arg1: memref<1x8x128xf32, #tpu.memory_space<vmem>>, %arg2: memref<1x1x8xf32, #tpu.memory_space<vmem>>, %arg3: memref<128x512xf32, #tpu.memory_space<vmem>>, %arg4: memref<1x512xf32, #tpu.memory_space<vmem>>, %arg5: memref<256x256xf32, #tpu.memory_space<vmem>>, %arg6: memref<1x256xf32, #tpu.memory_space<vmem>>, %arg7: memref<1x8x256xf32, #tpu.memory_space<vmem>>) attributes {dimension_semantics = [#tpu.dimension_semantics<parallel>], iteration_bounds = array<i64: 2>, scalar_prefetch = 0 : i64, scratch_operands = 0 : i64, tpu.core_type = #tpu.core_type<tc>, window_params = [{transform_indices = @transform_0, window_bounds = array<i64: 1, 8, 128>}, {transform_indices = @transform_1, window_bounds = array<i64: 1, 1, 8>}, {pipeline_mode = #tpu.pipeline_mode<synchronous>, transform_indices = @transform_2, window_bounds = array<i64: 128, 512>}, {pipeline_mode = #tpu.pipeline_mode<synchronous>, transform_indices = @transform_3, window_bounds = array<i64: 1, 512>}, {pipeline_mode = #tpu.pipeline_mode<synchronous>, transform_indices = @transform_4, window_bounds = array<i64: 256, 256>}, {pipeline_mode = #tpu.pipeline_mode<synchronous>, transform_indices = @transform_5, window_bounds = array<i64: 1, 256>}, {transform_indices = @transform_6, window_bounds = array<i64: 1, 8, 256>}]} {
    %c0 = arith.constant 0 : index
    %c0_0 = arith.constant 0 : index
    %c0_1 = arith.constant 0 : index
    %0 = vector.load %arg1[%c0, %c0_0, %c0_1] : memref<1x8x128xf32, #tpu.memory_space<vmem>>, vector<1x8x128xf32>
    %1 = vector.shape_cast %0 : vector<1x8x128xf32> to vector<8x128xf32>
    %c0_2 = arith.constant 0 : index
    %c0_3 = arith.constant 0 : index
    %c0_4 = arith.constant 0 : index
    %2 = vector.load %arg2[%c0_2, %c0_3, %c0_4] : memref<1x1x8xf32, #tpu.memory_space<vmem>>, vector<1x1x8xf32>
    %3 = vector.shape_cast %2 : vector<1x1x8xf32> to vector<1x8xf32>
    %4 = tpu.iota {dimensions = array<i32: 0>} : vector<8x8xi32>
    %5 = tpu.iota {dimensions = array<i32: 1>} : vector<8x8xi32>
    %6 = arith.cmpi ne, %4, %5 : vector<8x8xi32>
    %7 = arith.extui %6 : vector<8x8xi1> to vector<8x8xi32>
    %8 = arith.sitofp %7 : vector<8x8xi32> to vector<8x8xf32>
    %9 = vector.shape_cast %3 : vector<1x8xf32> to vector<1x8x1xf32>
    %10 = vector.shape_cast %3 : vector<1x8xf32> to vector<1x1x8xf32>
    %11 = vector.broadcast %9 : vector<1x8x1xf32> to vector<1x8x8xf32>
    %12 = vector.broadcast %10 : vector<1x1x8xf32> to vector<1x8x8xf32>
    %13 = arith.mulf %11, %12 : vector<1x8x8xf32>
    %14 = vector.shape_cast %8 : vector<8x8xf32> to vector<1x8x8xf32>
    %15 = arith.mulf %13, %14 : vector<1x8x8xf32>
    %c0_5 = arith.constant 0 : index
    %c0_6 = arith.constant 0 : index
    %16 = vector.load %arg3[%c0_5, %c0_6] : memref<128x512xf32, #tpu.memory_space<vmem>>, vector<128x128xf32>
    %cst = arith.constant dense<0.000000e+00> : vector<8x128xf32>
    %17 = tpu.matmul %1, %16, %cst {dimension_numbers = #tpu.dot_dimension_numbers<[1], [0], [0], [1], [0, 0, 1, 1], [], []>} : vector<8x128xf32>, vector<128x128xf32>, vector<8x128xf32> -> vector<8x128xf32>
    %c0_7 = arith.constant 0 : index
    %c0_8 = arith.constant 0 : index
    %18 = vector.load %arg4[%c0_7, %c0_8] : memref<1x512xf32, #tpu.memory_space<vmem>>, vector<1x128xf32>
    %19 = vector.broadcast %18 : vector<1x128xf32> to vector<8x128xf32>
    %20 = arith.addf %17, %19 : vector<8x128xf32>
    %21 = vector.shape_cast %20 : vector<8x128xf32> to vector<1x8x128xf32>
    "tpu.trace_start"() <{level = 10 : i32, message = "blh,bmh->blm"}> : () -> ()
    %cst_9 = arith.constant dense<0.000000e+00> : vector<1x8x8xf32>
    %22 = tpu.matmul %21, %21, %cst_9 {dimension_numbers = #tpu.dot_dimension_numbers<[2], [2], [1], [1], [0, 0, 0, 1, 1, 1], [0], [0]>} : vector<1x8x128xf32>, vector<1x8x128xf32>, vector<1x8x8xf32> -> vector<1x8x8xf32>
    "tpu.trace_stop"() : () -> ()
    %c0_10 = arith.constant 0 : index
    %c128 = arith.constant 128 : index
    %23 = vector.load %arg3[%c0_10, %c128] : memref<128x512xf32, #tpu.memory_space<vmem>>, vector<128x128xf32>
    %cst_11 = arith.constant dense<0.000000e+00> : vector<8x128xf32>
    %24 = tpu.matmul %1, %23, %cst_11 {dimension_numbers = #tpu.dot_dimension_numbers<[1], [0], [0], [1], [0, 0, 1, 1], [], []>} : vector<8x128xf32>, vector<128x128xf32>, vector<8x128xf32> -> vector<8x128xf32>
    %c0_12 = arith.constant 0 : index
    %c128_13 = arith.constant 128 : index
    %25 = vector.load %arg4[%c0_12, %c128_13] : memref<1x512xf32, #tpu.memory_space<vmem>>, vector<1x128xf32>
    %26 = vector.broadcast %25 : vector<1x128xf32> to vector<8x128xf32>
    %27 = arith.addf %24, %26 : vector<8x128xf32>
    %28 = vector.shape_cast %27 : vector<8x128xf32> to vector<1x8x128xf32>
    "tpu.trace_start"() <{level = 10 : i32, message = "blh,bmh->blm"}> : () -> ()
    %cst_14 = arith.constant dense<0.000000e+00> : vector<1x8x8xf32>
    %29 = tpu.matmul %28, %28, %cst_14 {dimension_numbers = #tpu.dot_dimension_numbers<[2], [2], [1], [1], [0, 0, 0, 1, 1, 1], [0], [0]>} : vector<1x8x128xf32>, vector<1x8x128xf32>, vector<1x8x8xf32> -> vector<1x8x8xf32>
    "tpu.trace_stop"() : () -> ()
    %30 = arith.maximumf %22, %29 : vector<1x8x8xf32>
    %c0_15 = arith.constant 0 : index
    %c256 = arith.constant 256 : index
    %31 = vector.load %arg3[%c0_15, %c256] : memref<128x512xf32, #tpu.memory_space<vmem>>, vector<128x128xf32>
    %cst_16 = arith.constant dense<0.000000e+00> : vector<8x128xf32>
    %32 = tpu.matmul %1, %31, %cst_16 {dimension_numbers = #tpu.dot_dimension_numbers<[1], [0], [0], [1], [0, 0, 1, 1], [], []>} : vector<8x128xf32>, vector<128x128xf32>, vector<8x128xf32> -> vector<8x128xf32>
    %c0_17 = arith.constant 0 : index
    %c256_18 = arith.constant 256 : index
    %33 = vector.load %arg4[%c0_17, %c256_18] : memref<1x512xf32, #tpu.memory_space<vmem>>, vector<1x128xf32>
    %34 = vector.broadcast %33 : vector<1x128xf32> to vector<8x128xf32>
    %35 = arith.addf %32, %34 : vector<8x128xf32>
    %36 = vector.shape_cast %35 : vector<8x128xf32> to vector<1x8x128xf32>
    "tpu.trace_start"() <{level = 10 : i32, message = "blh,bmh->blm"}> : () -> ()
    %cst_19 = arith.constant dense<0.000000e+00> : vector<1x8x8xf32>
    %37 = tpu.matmul %36, %36, %cst_19 {dimension_numbers = #tpu.dot_dimension_numbers<[2], [2], [1], [1], [0, 0, 0, 1, 1, 1], [0], [0]>} : vector<1x8x128xf32>, vector<1x8x128xf32>, vector<1x8x8xf32> -> vector<1x8x8xf32>
    "tpu.trace_stop"() : () -> ()
    %38 = arith.maximumf %30, %37 : vector<1x8x8xf32>
    %c0_20 = arith.constant 0 : index
    %c384 = arith.constant 384 : index
    %39 = vector.load %arg3[%c0_20, %c384] : memref<128x512xf32, #tpu.memory_space<vmem>>, vector<128x128xf32>
    %cst_21 = arith.constant dense<0.000000e+00> : vector<8x128xf32>
    %40 = tpu.matmul %1, %39, %cst_21 {dimension_numbers = #tpu.dot_dimension_numbers<[1], [0], [0], [1], [0, 0, 1, 1], [], []>} : vector<8x128xf32>, vector<128x128xf32>, vector<8x128xf32> -> vector<8x128xf32>
    %c0_22 = arith.constant 0 : index
    %c384_23 = arith.constant 384 : index
    %41 = vector.load %arg4[%c0_22, %c384_23] : memref<1x512xf32, #tpu.memory_space<vmem>>, vector<1x128xf32>
    %42 = vector.broadcast %41 : vector<1x128xf32> to vector<8x128xf32>
    %43 = arith.addf %40, %42 : vector<8x128xf32>
    %44 = vector.shape_cast %43 : vector<8x128xf32> to vector<1x8x128xf32>
    "tpu.trace_start"() <{level = 10 : i32, message = "blh,bmh->blm"}> : () -> ()
    %cst_24 = arith.constant dense<0.000000e+00> : vector<1x8x8xf32>
    %45 = tpu.matmul %44, %44, %cst_24 {dimension_numbers = #tpu.dot_dimension_numbers<[2], [2], [1], [1], [0, 0, 0, 1, 1, 1], [0], [0]>} : vector<1x8x128xf32>, vector<1x8x128xf32>, vector<1x8x8xf32> -> vector<1x8x8xf32>
    "tpu.trace_stop"() : () -> ()
    %46 = arith.maximumf %38, %45 : vector<1x8x8xf32>
    %47 = arith.mulf %46, %15 : vector<1x8x8xf32>
    %cst_25 = arith.constant dense<0xFF800000> : vector<1x8xf32>
    %48 = vector.multi_reduction <maximumf>, %47, %cst_25 [2] : vector<1x8x8xf32> to vector<1x8xf32>
    %49 = vector.shape_cast %48 : vector<1x8xf32> to vector<1x8x1xf32>
    %50 = vector.broadcast %49 : vector<1x8x1xf32> to vector<1x8x8xf32>
    %51 = arith.subf %47, %50 : vector<1x8x8xf32>
    %52 = math.exp %51 : vector<1x8x8xf32>
    %53 = arith.mulf %52, %15 : vector<1x8x8xf32>
    %cst_26 = arith.constant dense<0.000000e+00> : vector<1x8xf32>
    %54 = vector.multi_reduction <add>, %53, %cst_26 [2] : vector<1x8x8xf32> to vector<1x8xf32>
    %55 = vector.shape_cast %54 : vector<1x8xf32> to vector<1x8x1xf32>
    %cst_27 = arith.constant 9.99999982E-14 : f32
    %56 = vector.broadcast %cst_27 : f32 to vector<1x8x1xf32>
    %57 = arith.addf %55, %56 : vector<1x8x1xf32>
    %58 = tpu.reciprocal %57 {approx = true} : vector<1x8x1xf32> -> vector<1x8x1xf32>
    %59 = vector.broadcast %58 : vector<1x8x1xf32> to vector<1x8x8xf32>
    %60 = arith.mulf %53, %59 : vector<1x8x8xf32>
    "tpu.trace_start"() <{level = 10 : i32, message = "blm,bmh->blh"}> : () -> ()
    %cst_28 = arith.constant dense<0.000000e+00> : vector<1x8x128xf32>
    %61 = tpu.matmul %60, %0, %cst_28 {dimension_numbers = #tpu.dot_dimension_numbers<[2], [1], [1], [2], [0, 0, 0, 1, 1, 2], [0], [0]>} : vector<1x8x8xf32>, vector<1x8x128xf32>, vector<1x8x128xf32> -> vector<1x8x128xf32>
    "tpu.trace_stop"() : () -> ()
    %62 = vector.shape_cast %61 : vector<1x8x128xf32> to vector<8x128xf32>
    %63 = tpu.concatenate %1, %62 in 1 : vector<8x128xf32>, vector<8x128xf32> -> vector<8x256xf32>
    %c0_29 = arith.constant 0 : index
    %c0_30 = arith.constant 0 : index
    %64 = vector.load %arg5[%c0_29, %c0_30] : memref<256x256xf32, #tpu.memory_space<vmem>>, vector<256x256xf32>
    %cst_31 = arith.constant dense<0.000000e+00> : vector<8x256xf32>
    %65 = tpu.matmul %63, %64, %cst_31 {dimension_numbers = #tpu.dot_dimension_numbers<[1], [0], [0], [1], [0, 0, 1, 1], [], []>} : vector<8x256xf32>, vector<256x256xf32>, vector<8x256xf32> -> vector<8x256xf32>
    %c0_32 = arith.constant 0 : index
    %c0_33 = arith.constant 0 : index
    %66 = vector.load %arg6[%c0_32, %c0_33] : memref<1x256xf32, #tpu.memory_space<vmem>>, vector<1x256xf32>
    %67 = vector.broadcast %66 : vector<1x256xf32> to vector<8x256xf32>
    %68 = arith.addf %65, %67 : vector<8x256xf32>
    %69 = arith.negf %68 : vector<8x256xf32>
    %70 = math.exp %69 : vector<8x256xf32>
    %cst_34 = arith.constant 1.000000e+00 : f32
    %71 = vector.broadcast %cst_34 : f32 to vector<8x256xf32>
    %72 = arith.addf %71, %70 : vector<8x256xf32>
    %73 = arith.divf %71, %72 : vector<8x256xf32>
    %74 = vector.extract_strided_slice %73 {offsets = [0, 0], sizes = [8, 128], strides = [1, 1]} : vector<8x256xf32> to vector<8x128xf32>
    %75 = vector.shape_cast %74 : vector<8x128xf32> to vector<1x8x128xf32>
    %76 = vector.extract_strided_slice %73 {offsets = [0, 128], sizes = [8, 128], strides = [1, 1]} : vector<8x256xf32> to vector<8x128xf32>
    %77 = vector.shape_cast %76 : vector<8x128xf32> to vector<1x8x128xf32>
    %78 = arith.mulf %75, %0 : vector<1x8x128xf32>
    %c0_35 = arith.constant 0 : index
    %c0_36 = arith.constant 0 : index
    %c0_37 = arith.constant 0 : index
    %79 = vector.load %arg7[%c0_35, %c0_36, %c0_37] : memref<1x8x256xf32, #tpu.memory_space<vmem>>, vector<1x8x128xf32>
    tpu.vector_store %arg7[%c0_35, %c0_36, %c0_37], %78 {strides = array<i32>} : memref<1x8x256xf32, #tpu.memory_space<vmem>>, vector<1x8x128xf32>,
    %80 = arith.mulf %77, %61 : vector<1x8x128xf32>
    %c0_38 = arith.constant 0 : index
    %c0_39 = arith.constant 0 : index
    %c128_40 = arith.constant 128 : index
    %81 = vector.load %arg7[%c0_38, %c0_39, %c128_40] : memref<1x8x256xf32, #tpu.memory_space<vmem>>, vector<1x8x128xf32>
    tpu.vector_store %arg7[%c0_38, %c0_39, %c128_40], %80 {strides = array<i32>} : memref<1x8x256xf32, #tpu.memory_space<vmem>>, vector<1x8x128xf32>,
    return
  }
  func.func @transform_0(%arg0: i32) -> (i32, i32, i32) {
    %c0_i32 = arith.constant 0 : i32
    %c0_i32_0 = arith.constant 0 : i32
    %c0_i32_1 = arith.constant 0 : i32
    return %arg0, %c0_i32, %c0_i32_0 : i32, i32, i32
  }
  func.func @transform_1(%arg0: i32) -> (i32, i32, i32) {
    %c0_i32 = arith.constant 0 : i32
    %c0_i32_0 = arith.constant 0 : i32
    %c0_i32_1 = arith.constant 0 : i32
    return %arg0, %c0_i32, %c0_i32_0 : i32, i32, i32
  }
  func.func @transform_2(%arg0: i32) -> (i32, i32) {
    %c0_i32 = arith.constant 0 : i32
    %c0_i32_0 = arith.constant 0 : i32
    %c0_i32_1 = arith.constant 0 : i32
    return %c0_i32, %c0_i32_0 : i32, i32
  }
  func.func @transform_3(%arg0: i32) -> (i32, i32) {
    %c0_i32 = arith.constant 0 : i32
    %c0_i32_0 = arith.constant 0 : i32
    %c0_i32_1 = arith.constant 0 : i32
    return %c0_i32, %c0_i32_0 : i32, i32
  }
  func.func @transform_4(%arg0: i32) -> (i32, i32) {
    %c0_i32 = arith.constant 0 : i32
    %c0_i32_0 = arith.constant 0 : i32
    %c0_i32_1 = arith.constant 0 : i32
    return %c0_i32, %c0_i32_0 : i32, i32
  }
  func.func @transform_5(%arg0: i32) -> (i32, i32) {
    %c0_i32 = arith.constant 0 : i32
    %c0_i32_0 = arith.constant 0 : i32
    %c0_i32_1 = arith.constant 0 : i32
    return %c0_i32, %c0_i32_0 : i32, i32
  }
  func.func @transform_6(%arg0: i32) -> (i32, i32, i32) {
    %c0_i32 = arith.constant 0 : i32
    %c0_i32_0 = arith.constant 0 : i32
    %c0_i32_1 = arith.constant 0 : i32
    return %arg0, %c0_i32, %c0_i32_0 : i32, i32, i32
  }
}

</mosaic_0001>

<bundles_post_ra>
// kernel: tpu_custom_call.1
= control target key start
LH: loop header
LB: loop body
LE: loop exit
PB: predicated region body
PF: predicated region fallthrough
CT: control target
= control target key end

     0   :  { %11 = vsyncpa [#allocation3], 0  ;;  %s2403_s0 = inlined_call_operand.hbm [shape: f32[2,8,128], index: 0, kind: input, shape index: {}]   ;;  %s2404_s1 = inlined_call_operand.vmem [shape: f32[2,1,8], index: 1, kind: input, shape index: {}]   ;;  %s2405_s2 = inlined_call_operand.hbm [shape: f32[128,512], index: 2, kind: input, shape index: {}]   ;;  %s2406_s3 = inlined_call_operand.vmem [shape: f32[1,512], index: 3, kind: input, shape index: {}]   ;;  %s2407_s4 = inlined_call_operand.hbm [shape: f32[256,256], index: 4, kind: input, shape index: {}]   ;;  %s2408_s5 = inlined_call_operand.vmem [shape: f32[1,256], index: 5, kind: input, shape index: {}]   ;;  %s2409_s6 = inlined_call_operand.hbm [shape: f32[2,8,256], index: 6, kind: output, shape index: {}]  }
   0x1   :  { %13 = vsyncpa [#allocation3 + $0x1], 0 }
   0x2   :  { %14 = vsyncpa [#allocation6], 0 }
   0x3   :  { %15 = vsyncpa [#allocation4], 0 }
   0x4   :  { %17 = vsyncpa [#allocation4 + $0x1], 0  ;;  %s2073_s21 = smov 0   ;;  %s2075_s22 = smov 0  }
   0x5   :  { %s2077_s23 = smov 0   ;;  %s2079_s24 = smov 0  }
   0x6 LB: > { %s2094_s25 = sadd.s32 4294967295, %s2025_s24   ;;  %s1353_s26 = sadd.s32 4294967294, %s2025_s24   ;;  %s2025_s24 = sphi %s2079_s24, %s2429_s24   ;;  %s2021_s23 = sphi %s2077_s23, %s2428_s23   ;;  %s2017_s22 = sphi %s2075_s22, %s2427_s22   ;;  %s2013_s21 = sphi %s2073_s21, %s2426_s21  }
   0x7   : > { %p43_p0 = scmp.ne.s32.totalorder %s2017_s22, %s2013_s21  ;;  %p2410_p1 = scmp.eq.s32.totalorder %s2094_s25, 0 }
   0x8   : > { %p183_p3 = scmp.eq.s32.totalorder %s1353_s26, 1  ;;  %p1354_p5 = scmp.ge.s32.totalorder %s2025_s24, 1 }
   0x9   : > { %p2103_p4 = por %p2410_p1, %p43_p0  ;;  %p190_p7 = scmp.lt.s32.totalorder %s2025_s24, 3 }
   0xa   : > { %p2108_p6 = por %p183_p3, %p43_p0  ;;  %s2027_s30 = smov [#allocation5]  }
   0xb   : > { %s2413_s27 = scalar_select %p2103_p4, 1, 0 }
   0xc   : > { %s2414_s28 = scalar_select %p2108_p6, 1, 0 }
   0xd   : > { %p2113_p8 = pnand %p1354_p5, %p190_p7  ;;  %s202_s7 = sshll.u32 %s2027_s30, 4  ;;  %s2117_s7 = int_to_ptr.vmem [resolvable:$true] %s202_s7 }
   0xe   : > { %s2028_s9 = smov [#allocation7]   ;;  %s1869_s13 = scalar_lea.hbm %s2405_s2, 8192 }
   0xf   : > { %p1795_p9 = pneg %p2113_p8  ;;  %s218_s10 = sshll.u32 %s2028_s9, 4  ;;  %s2128_s10 = int_to_ptr.vmem [resolvable:$true] %s218_s10 }
  0x10   : > { %p1870_p12 = scmp.ne.s32.totalorder %s2405_s2, %s1869_s13  ;;  %p1876_p5 = scmp.lt.u32.totalorder %s1869_s13, %s2405_s2 }
  0x11   : > { %p2124_p11 = pnand %p1795_p9, %p2410_p1 }
  0x13   : > { %p1871_p13 = pneg %p2124_p11 }
  0x15   : > { %p1872_p0 = pnand %p1871_p13, %p1870_p12 }
  0x17   : > { %p1873_p3 = pneg %p1872_p0 }
  0x19   : > { %p1878_p7 = pnand %p1876_p5, %p1873_p3 }
  0x1b   : > { %1881 = shalt.err (!%p1878_p7)
}
  0x1c   : > { %s1882_s18 = scalar_lea.vmem %s2117_s7, 8192  ;;  %p1890_p2 = scmp.lt.s32.totalorder %s2117_s7, %s2117_s7 }
  0x1d   : > { %p1883_p9 = scmp.ne.s32.totalorder %s2117_s7, %s1882_s18  ;;  %p1891_p12 = scmp.lt.s32.totalorder %s1882_s18, %s1882_s18 }
  0x1f   : > { %p1885_p10 = pnand %p1883_p9, %p1871_p13  ;;  %p1892_p0 = por %p1891_p12, %p1890_p2 }
  0x21   : > { %p1886_p1 = pneg %p1885_p10 }
  0x23   : > { %p1893_p6 = pnand %p1892_p0, %p1886_p1 }
  0x25   : > { %1896 = shalt.err (!%p1893_p6)
}
  0x26   : > { %s2029_s19 = smov 512   ;;  %s2030_s20 = smov 32  }
  0x27   : > { %1798 = dma.hbm_to_vmem [thread:$0]  (!%p2124_p11), %s2405_s2, 8192, %s2117_s7, [#allocation6], %s2029_s19, %s2029_s19, %s2030_s20  }
  0x28   : > { %s1897_s12 = scalar_lea.hbm %s2407_s4, 8192 }
  0x29   : > { %p1898_p2 = scmp.ne.s32.totalorder %s2407_s4, %s1897_s12  ;;  %p1904_p10 = scmp.lt.u32.totalorder %s1897_s12, %s2407_s4 }
  0x2b   : > { %p1900_p1 = pnand %p1898_p2, %p1871_p13 }
  0x2d   : > { %p1901_p6 = pneg %p1900_p1 }
  0x2f   : > { %p1906_p3 = pnand %p1904_p10, %p1901_p6 }
  0x31   : > { %1909 = shalt.err (!%p1906_p3)
}
  0x32   : > { %s1910_s7 = scalar_lea.vmem %s2128_s10, 8192  ;;  %p1918_p12 = scmp.lt.s32.totalorder %s2128_s10, %s2128_s10 }
  0x33   : > { %p1911_p5 = scmp.ne.s32.totalorder %s2128_s10, %s1910_s7  ;;  %p1919_p0 = scmp.lt.s32.totalorder %s1910_s7, %s1910_s7 }
  0x35   : > { %p1913_p7 = pnand %p1911_p5, %p1871_p13  ;;  %p1920_p2 = por %p1919_p0, %p1918_p12 }
  0x37   : > { %p1914_p9 = pneg %p1913_p7 }
  0x39   : > { %p1921_p1 = pnand %p1920_p2, %p1914_p9 }
  0x3b   : > { %1924 = shalt.err (!%p1921_p1)
}
  0x3c   : > { %s2031_s17 = smov 256   ;;  %s2032_s18 = smov 16  }
  0x3d   : > { %1801 = dma.hbm_to_vmem [thread:$0]  (!%p2124_p11), %s2407_s4, 8192, %s2128_s10, [#allocation6], %s2031_s17, %s2031_s17, %s2032_s18  }
  0x3e   : > { %s2183_s26 = sadd.s32 1, %s2025_s24   ;;  %s30_s9 = sadd.s32 1, %s2021_s23 }
  0x3f   : > { %s27_s30 = ssub.s32 %s2025_s24, %s2183_s26  ;;  %p37_p6 = scmp.ne.s32.totalorder %s2021_s23, %s2017_s22 }
  0x40   : > { %p28_p13 = scmp.eq.s32.totalorder %s27_s30, 0  ;;  %p38_p10 = scmp.eq.s32.totalorder %s2025_s24, 0 }
  0x41   : > { %p2417_p5 = scmp.eq.s32.totalorder %s2094_s25, 1  ;;  %p1812_p9 = scmp.lt.s32.totalorder %s2025_s24, 2 }
  0x42   : > { %s2192_s11 = scalar_select %p28_p13, %s2021_s23, %s30_s9  }
  0x43   : > { %p39_p3 = por %p38_p10, %p37_p6  ;;  %p2196_p7 = por %p2417_p5, %p37_p6 }
  0x44   : > { %s235_s8 = sand.u32 1, %s2021_s23   ;;  %s1359_s10 = sshll.u32 %s2025_s24, 7 }
  0x45   : > { %s2418_s12 = scalar_select %p2196_p7, 1, 0 }
  0x46   : > { %s1358_s13 = sshll.u32 %s235_s8, 3  ;;  %s2206_s16 = scalar_lea.hbm %s2403_s0, %s1359_s10 }
  0x47   : > { %s239_s7 = scalar_lea.vmem [#allocation2], %s1358_s13  ;;  %p2210_p11 = pnand %p1812_p9, %p39_p3 }
  0x48   : > { %s246_s17 = sshll.u32 %s239_s7, 4  ;;  %s236_s19 = scalar_lea.sflag [#allocation3], %s235_s8  ;;  %s2208_s17 = int_to_ptr.vmem [resolvable:$true] %s246_s17 }
  0x49   : > { %s1925_s20 = scalar_lea.hbm %s2206_s16, 128  ;;  %p1927_p0 = pneg %p2210_p11 }
  0x4a   : > { %p1926_p12 = scmp.ne.s32.totalorder %s2206_s16, %s1925_s20  ;;  %s1930_s13 = scalar_lea.hbm %s2403_s0, 256 }
  0x4b   : > { %p1931_p13 = scmp.lt.u32.totalorder %s2206_s16, %s2403_s0  ;;  %p1932_p6 = scmp.lt.u32.totalorder %s1930_s13, %s1925_s20 }
  0x4c   : > { %p1928_p2 = pnand %p1927_p0, %p1926_p12  ;;  %p1934_p3 = scmp.lt.u32.totalorder %s1925_s20, %s2206_s16 }
  0x4d   : > { %p1933_p10 = por %p1932_p6, %p1931_p13 }
  0x4e   : > { %p1929_p1 = pneg %p1928_p2 }
  0x4f   : > { %p1935_p5 = por %p1934_p3, %p1933_p10 }
  0x51   : > { %p1936_p9 = pnand %p1935_p5, %p1929_p1 }
  0x53   : > { %1939 = shalt.err (!%p1936_p9)
}
  0x54   : > { %s1940_s8 = scalar_lea.vmem %s2208_s17, 128  ;;  %s2033_s15 = smov [#allocation2]  }
  0x55   : > { %p1941_p12 = scmp.ne.s32.totalorder %s2208_s17, %s1940_s8  ;;  %s1945_s7 = sshll.u32 %s2033_s15, 4  ;;  %s1946_s7 = int_to_ptr.vmem [resolvable:$false] %s1945_s7 }
  0x56   : > { %s1947_s30 = scalar_lea.vmem %s1946_s7, 256  ;;  %p1948_p4 = scmp.lt.s32.totalorder %s2208_s17, %s1946_s7 }
  0x57   : > { %p1943_p2 = pnand %p1941_p12, %p1927_p0  ;;  %p1949_p13 = scmp.lt.s32.totalorder %s1947_s30, %s1940_s8 }
  0x59   : > { %p1944_p7 = pneg %p1943_p2  ;;  %p1950_p6 = por %p1949_p13, %p1948_p4 }
  0x5b   : > { %p1951_p10 = pnand %p1950_p6, %p1944_p7 }
  0x5d   : > { %1954 = shalt.err (!%p1951_p10)
}
  0x5e   : > { %1805 = dma.hbm_to_vmem [thread:$0]  (!%p2210_p11), %s2206_s16, 128, %s2208_s17, %s236_s19  }
  0x5f   : > { %261 = sbr.rel (%p2113_p8) target bundleno = 1892 (0x764), region = 44  ;;  %s2242_s20 = sand.u32 (!%p2113_p8), 1, %s2017_s22  }
  0x60   : > { %s1361_s9 = sshll.u32 (!%p2113_p8), %s2242_s20, 3  ;;  %s264_s13 = scalar_lea.sflag (!%p2113_p8), [#allocation3], %s2242_s20 }
  0x61   : > { %s2246_s10 = scalar_lea.vmem (!%p2113_p8), [#allocation2], %s1361_s9  ;;  %p2420_p4 = scmp.ne.s32.totalorder (!%p2113_p8), %s2413_s27, 0 }
  0x66   : > { %2000 = dma.done.wait (%p2420_p4), %s264_s13, 128  }
  0x67   : > { %2002 = vsyncadd (%p2420_p4), %s264_s13, 4294967168  ;;  %p2421_p7 = scmp.eq.s32.totalorder %s2094_s25, 0 }
  0x69   : > { %2004 = dma.done.wait (%p2421_p7), [#allocation6], 16384   ;;  %p2422_p8 = pmov %p2421_p7 }
  0x6a   : > { %v2034_v0 = vmov 0.0|0.0   ;;  %vm2035_vm0 = vmmov 0   ;;  %v2036_v1 = vmov 0.0   ;;  %v334_v2 = vld [vmem:[#allocation5] sm:$0xff]  ;;  %v497_v26 = vld [vmem:[#allocation5 + $0x8] sm:$0xff]  ;;  %v2270_v28 = vld [vmem:[%s2246_s10] sm:$0xff] }
  0x6b   : > { %2006 = vsyncadd (%p2422_p8), [#allocation6], 4294950912  ;;  %1623 = vmatprep.subr.bf16.mxu0 %v2034_v0  ;;  %1490 = vmatprep.mubr.msk.f32.mxu0 %vm2035_vm0, %v2036_v1  ;;  %v335_v3 = vld [vmem:[#allocation5 + $0x20] sm:$0xff]  ;;  %v498_v27 = vld [vmem:[#allocation5 + $0x28] sm:$0xff]  ;;  %p307_p11 = scmp.lt.s32.totalorder %s2094_s25, 1  ;;  %vm990_vm2 = vcmask 64512  }
  0x6c   : > { %1493 = vmatprep.subr.mxu1 %v2036_v1  ;;  %1495 = vmatprep.mubr.msk.f32.mxu1 %vm2035_vm0, %v2036_v1  ;;  %v336_v4 = vld [vmem:[#allocation5 + $0x40] sm:$0xff]  ;;  %v1624_v5 = vpack.c.bf16 %v335_v3, %v334_v2  ;;  %v1648_v29 = vpack.c.bf16 %v498_v27, %v497_v26  ;;  %v499_v30 = vld [vmem:[#allocation5 + $0x48] sm:$0xff]  ;;  %v1366_v51 = vld [vmem:[%s2406_s3] ss:$0 sm:$0xff]  ;;  %s1364_s27 = sshll.u32 %s2242_s20, 4  ;;  %s1378_s29 = sshll.u32 %s2094_s25, 8 }
  0x6d   : > { %v337_v6 = vld [vmem:[#allocation5 + $0x60] sm:$0xff]  ;;  %v500_v31 = vld [vmem:[#allocation5 + $0x68] sm:$0xff]  ;;  %v1367_v55 = vld [vmem:[%s2406_s3 + $0x1] ss:$0 sm:$0xff]  ;;  %s308_s14 = scalar_select %p307_p11, %s2094_s25, 1 }
  0x6e   : > { %1625 = vmatpush3.bf16.msra.mxu0 %v1624_v5  ;;  %v1627_v7 = vpack.c.bf16 %v337_v6, %v336_v4  ;;  %v338_v8 = vld [vmem:[#allocation5 + $0x80] sm:$0xff]  ;;  %v1651_v32 = vpack.c.bf16 %v500_v31, %v499_v30  ;;  %v501_v33 = vld [vmem:[#allocation5 + $0x88] sm:$0xff]  ;;  %v661_v57 = vld [vmem:[#allocation5 + $0x10] sm:$0xff]  ;;  %s306_s16 = scalar_lea.vmem [#allocation8], %s1364_s27  ;;  %s1241_s25 = scalar_lea.sflag [#allocation4], %s2242_s20 }
  0x6f   : > { %1626 = vmatprep.subr.bf16.mxu0 %v2034_v0  ;;  %v339_v9 = vld [vmem:[#allocation5 + $0xa0] sm:$0xff]  ;;  %v502_v34 = vld [vmem:[#allocation5 + $0xa8] sm:$0xff]  ;;  %v662_v58 = vld [vmem:[#allocation5 + $0x30] sm:$0xff]  ;;  %s309_s7 = scalar_lea.vmem %s2404_s1, %s308_s14  ;;  %s1255_s17 = sshll.u32 %s306_s16, 4  ;;  %s2361_s17 = int_to_ptr.vmem [resolvable:$true] %s1255_s17 }
  0x70   : > { %v1630_v10 = vpack.c.bf16 %v339_v9, %v338_v8  ;;  %v340_v11 = vld [vmem:[#allocation5 + $0xc0] sm:$0xff]  ;;  %v1654_v35 = vpack.c.bf16 %v502_v34, %v501_v33  ;;  %v503_v36 = vld [vmem:[#allocation5 + $0xc8] sm:$0xff]  ;;  %v1672_v61 = vpack.c.bf16 %v662_v58, %v661_v57  ;;  %v663_v62 = vld [vmem:[#allocation5 + $0x50] sm:$0xff]  ;;  %s2359_s14 = scalar_lea.hbm %s2409_s6, %s1378_s29  ;;  %s1955_s8 = scalar_lea.vmem %s2361_s17, 256 }
  0x71   : > { %v341_v12 = vld [vmem:[#allocation5 + $0xe0] sm:$0xff]  ;;  %v504_v37 = vld [vmem:[#allocation5 + $0xe8] sm:$0xff]  ;;  %v664_v63 = vld [vmem:[#allocation5 + $0x70] sm:$0xff]  ;;  %p1956_p0 = scmp.ne.s32.totalorder %s2361_s17, %s1955_s8  ;;  %p2423_p1 = scmp.ne.s32.totalorder %s2418_s12, 0 }
  0x72   : > { %1628 = vmatpush3.bf16.msra.mxu0 %v1627_v7  ;;  %v1633_v13 = vpack.c.bf16 %v341_v12, %v340_v11  ;;  %v342_v14 = vld [vmem:[#allocation5 + $0x100] sm:$0xff]  ;;  %v1657_v38 = vpack.c.bf16 %v504_v37, %v503_v36  ;;  %v505_v39 = vld [vmem:[#allocation5 + $0x108] sm:$0xff]  ;;  %v1675_v2 = vpack.c.bf16 %v664_v63, %v663_v62  ;;  %v665_v3 = vld [vmem:[#allocation5 + $0x90] sm:$0xff]  ;;  %v312_v62 = vlaneseq  ;;  %s2037_s15 = smov [#allocation8]  }
  0x73   : > { %1629 = vmatprep.subr.bf16.mxu0 %v2034_v0  ;;  %v343_v15 = vld [vmem:[#allocation5 + $0x120] sm:$0xff]  ;;  %v506_v40 = vld [vmem:[#allocation5 + $0x128] sm:$0xff]  ;;  %v666_v4 = vld [vmem:[#allocation5 + $0xb0] sm:$0xff]  ;;  %p1957_p3 = pnand %p1956_p0, %p2423_p1 }
  0x74   : > { %v1636_v16 = vpack.c.bf16 %v343_v15, %v342_v14  ;;  %v344_v17 = vld [vmem:[#allocation5 + $0x140] sm:$0xff]  ;;  %v1660_v41 = vpack.c.bf16 %v506_v40, %v505_v39  ;;  %v507_v42 = vld [vmem:[#allocation5 + $0x148] sm:$0xff]  ;;  %v1678_v5 = vpack.c.bf16 %v666_v4, %v665_v3  ;;  %v667_v6 = vld [vmem:[#allocation5 + $0xd0] sm:$0xff]  ;;  %v2336_v63 = vshrl.u32 %v312_v62, 7 }
  0x75   : > { %v345_v18 = vld [vmem:[#allocation5 + $0x160] sm:$0xff]  ;;  %v508_v43 = vld [vmem:[#allocation5 + $0x168] sm:$0xff]  ;;  %v668_v7 = vld [vmem:[#allocation5 + $0xf0] sm:$0xff]  ;;  %p1958_p5 = pneg %p1957_p3 }
  0x76   : > { %1631 = vmatpush3.bf16.msra.mxu0 %v1630_v10  ;;  %v1639_v19 = vpack.c.bf16 %v345_v18, %v344_v17  ;;  %v346_v20 = vld [vmem:[#allocation5 + $0x180] sm:$0xff]  ;;  %v1663_v44 = vpack.c.bf16 %v508_v43, %v507_v42  ;;  %v509_v45 = vld [vmem:[#allocation5 + $0x188] sm:$0xff]  ;;  %v1681_v8 = vpack.c.bf16 %v668_v7, %v667_v6  ;;  %v669_v9 = vld [vmem:[#allocation5 + $0x110] sm:$0xff] }
  0x77   : > { %1632 = vmatprep.subr.bf16.mxu0 %v2034_v0  ;;  %v347_v21 = vld [vmem:[#allocation5 + $0x1a0] sm:$0xff]  ;;  %v510_v46 = vld [vmem:[#allocation5 + $0x1a8] sm:$0xff]  ;;  %v670_v10 = vld [vmem:[#allocation5 + $0x130] sm:$0xff] }
  0x78   : > { %v1642_v22 = vpack.c.bf16 %v347_v21, %v346_v20  ;;  %v348_v23 = vld [vmem:[#allocation5 + $0x1c0] sm:$0xff]  ;;  %v1666_v47 = vpack.c.bf16 %v510_v46, %v509_v45  ;;  %v511_v48 = vld [vmem:[#allocation5 + $0x1c8] sm:$0xff]  ;;  %v1684_v11 = vpack.c.bf16 %v670_v10, %v669_v9  ;;  %v671_v12 = vld [vmem:[#allocation5 + $0x150] sm:$0xff] }
  0x79   : > { %v349_v24 = vld [vmem:[#allocation5 + $0x1e0] sm:$0xff]  ;;  %v512_v49 = vld [vmem:[#allocation5 + $0x1e8] sm:$0xff]  ;;  %v673_v15 = vld [vmem:[#allocation5 + $0x190] sm:$0xff] }
  0x7a   : > { %1634 = vmatpush3.bf16.msra.mxu0 %v1633_v13  ;;  %v1645_v25 = vpack.c.bf16 %v349_v24, %v348_v23  ;;  %v1669_v50 = vpack.c.bf16 %v512_v49, %v511_v48  ;;  %v672_v13 = vld [vmem:[#allocation5 + $0x170] sm:$0xff]  ;;  %v826_v30 = vld [vmem:[#allocation5 + $0x38] sm:$0xff] }
  0x7b   : > { %1635 = vmatprep.subr.bf16.mxu0 %v2034_v0  ;;  %v1687_v14 = vpack.c.bf16 %v672_v13, %v671_v12  ;;  %v675_v18 = vld [vmem:[#allocation5 + $0x1d0] sm:$0xff]  ;;  %v827_v34 = vld [vmem:[#allocation5 + $0x58] sm:$0xff] }
  0x7c   : > { %v1368_v26 = vld [vmem:[%s2406_s3 + $0x2] ss:$0 sm:$0xff]  ;;  %v829_v37 = vld [vmem:[#allocation5 + $0x98] sm:$0xff] }
  0x7d   : > { %v831_v40 = vld [vmem:[#allocation5 + $0xd8] sm:$0xff] }
  0x7e   : > { %1637 = vmatpush3.bf16.msra.mxu0 %v1636_v16  ;;  %v674_v16 = vld [vmem:[#allocation5 + $0x1b0] sm:$0xff]  ;;  %v833_v43 = vld [vmem:[#allocation5 + $0x118] sm:$0xff] }
  0x7f   : > { %1638 = vmatprep.subr.bf16.mxu0 %v2034_v0  ;;  %v1690_v17 = vpack.c.bf16 %v674_v16, %v673_v15  ;;  %v835_v46 = vld [vmem:[#allocation5 + $0x158] sm:$0xff] }
  0x80   : > { %v837_v49 = vld [vmem:[#allocation5 + $0x198] sm:$0xff] }
  0x82   : > { %1640 = vmatpush3.bf16.msra.mxu0 %v1639_v19  ;;  %v676_v19 = vld [vmem:[#allocation5 + $0x1f0] sm:$0xff] }
  0x83   : > { %1641 = vmatprep.subr.bf16.mxu0 %v2034_v0  ;;  %v1693_v20 = vpack.c.bf16 %v676_v19, %v675_v18  ;;  %v1080_v18 = vld [vmem:[#allocation7 + $0x18] sm:$0xff]  ;;  %v1077_v19 = vld [vmem:[#allocation7] sm:$0xff] }
  0x86   : > { %1643 = vmatpush3.bf16.msra.mxu0 %v1642_v22 }
  0x87   : > { %1644 = vmatprep.subr.bf16.mxu0 %v2034_v0 }
  0x8a   : > { %1646 = vmatpush3.bf16.msra.mxu0 %v1645_v25 }
  0x8b   : > { %1647 = vmatprep.subr.bf16.mxu0 %v2034_v0 }
  0x8d   : > { %1491 = vmatmul.mubr.f32.vlgmr.msra.gmra.mrb[0].mxu0 %v2270_v28 }
  0x8e   : > { %1649 = vmatpush3.bf16.msra.mxu0 %v1648_v29  ;;  %1530 = vmatprep.mubr.msk.f32.mxu0 %vm2035_vm0, %v2036_v1  ;;  %v825_v29 = vld [vmem:[#allocation5 + $0x18] sm:$0xff] }
  0x8f   : > { %1650 = vmatprep.subr.bf16.mxu0 %v2034_v0  ;;  %v1696_v33 = vpack.c.bf16 %v826_v30, %v825_v29  ;;  %v1086_v29 = vld [vmem:[#allocation7 + $0x48] sm:$0xff]  ;;  %v1088_v30 = vld [vmem:[#allocation7 + $0x58] sm:$0xff] }
  0x92   : > { %1652 = vmatpush3.bf16.msra.mxu0 %v1651_v32 }
  0x93   : > { %1653 = vmatprep.subr.bf16.mxu0 %v2034_v0 }
  0x96   : > { %1655 = vmatpush3.bf16.msra.mxu0 %v1654_v35  ;;  %v828_v35 = vld [vmem:[#allocation5 + $0x78] sm:$0xff] }
  0x97   : > { %1656 = vmatprep.subr.bf16.mxu0 %v2034_v0  ;;  %v1699_v36 = vpack.c.bf16 %v828_v35, %v827_v34  ;;  %v1087_v34 = vld [vmem:[#allocation7 + $0x50] sm:$0xff]  ;;  %v1090_v35 = vld [vmem:[#allocation7 + $0x68] sm:$0xff] }
  0x9a   : > { %1658 = vmatpush3.bf16.msra.mxu0 %v1657_v38  ;;  %v830_v38 = vld [vmem:[#allocation5 + $0xb8] sm:$0xff] }
  0x9b   : > { %1659 = vmatprep.subr.bf16.mxu0 %v2034_v0  ;;  %v1702_v39 = vpack.c.bf16 %v830_v38, %v829_v37 }
  0x9e   : > { %1661 = vmatpush3.bf16.msra.mxu0 %v1660_v41  ;;  %v832_v41 = vld [vmem:[#allocation5 + $0xf8] sm:$0xff] }
  0x9f   : > { %1662 = vmatprep.subr.bf16.mxu0 %v2034_v0  ;;  %v1705_v42 = vpack.c.bf16 %v832_v41, %v831_v40  ;;  %v1091_v40 = vld [vmem:[#allocation7 + $0x70] sm:$0xff]  ;;  %v1094_v41 = vld [vmem:[#allocation7 + $0x88] sm:$0xff] }
  0xa2   : > { %1664 = vmatpush3.bf16.msra.mxu0 %v1663_v44  ;;  %v834_v44 = vld [vmem:[#allocation5 + $0x138] sm:$0xff] }
  0xa3   : > { %1665 = vmatprep.subr.bf16.mxu0 %v2034_v0  ;;  %v1708_v45 = vpack.c.bf16 %v834_v44, %v833_v43 }
  0xa6   : > { %1667 = vmatpush3.bf16.msra.mxu0 %v1666_v47  ;;  %v836_v47 = vld [vmem:[#allocation5 + $0x178] sm:$0xff] }
  0xa7   : > { %1668 = vmatprep.subr.bf16.mxu0 %v2034_v0  ;;  %v1711_v48 = vpack.c.bf16 %v836_v47, %v835_v46  ;;  %v1095_v46 = vld [vmem:[#allocation7 + $0x90] sm:$0xff]  ;;  %v1098_v47 = vld [vmem:[#allocation7 + $0xa8] sm:$0xff] }
  0xaa   : > { %1670 = vmatpush3.bf16.msra.mxu0 %v1669_v50  ;;  %v838_v50 = vld [vmem:[#allocation5 + $0x1b8] sm:$0xff] }
  0xab   : > { %1533 = vmatprep.subr.mxu0 %v2036_v1 }
  0xad   : > { %1531 = vmatmul.mubr.f32.vlgmr.msra.gmra.mrb[2].mxu0 %v2270_v28 }
  0xae   : > { %1535 = vmatprep.mubr.msk.f32.mxu0 %vm2035_vm0, %v2036_v1 }
 0x160   : > { %v423_v52 = vpop.f32.mrb[0].mxu0 }
 0x161   : > { %v424_v53 = vadd.f32 %v1366_v51, %v423_v52  ;;  %v1492_v54 = vpop.f32.mrb[1].mxu0  ;;  %v1714_v51 = vpack.c.bf16 %v838_v50, %v837_v49  ;;  %v839_v52 = vld [vmem:[#allocation5 + $0x1d8] sm:$0xff] }
 0x163   : > { %1494 = vmatpush3.xpose.msra.mxu1 %v424_v53 }
 0x164   : > { %1573 = vmatprep.subr.mxu1 %v2036_v1 }
 0x166   : > { %1496 = vmatmul.mubr.f32.vlgmr.msra.gmra.mrb[0].mxu1 %v424_v53  ;;  %v840_v53 = vld [vmem:[#allocation5 + $0x1f8] sm:$0xff] }
 0x167   : > { %1575 = vmatprep.mubr.msk.f32.mxu1 %vm2035_vm0, %v2036_v1  ;;  %v1717_v54 = vpack.c.bf16 %v840_v53, %v839_v52  ;;  %v1099_v52 = vld [vmem:[#allocation7 + $0xb0] sm:$0xff]  ;;  %v1102_v53 = vld [vmem:[#allocation7 + $0xc8] sm:$0xff] }
 0x180   : > { %v586_v56 = vpop.f32.mrb[2].mxu0 }
 0x181   : > { %v587_v59 = vadd.f32 %v1367_v55, %v586_v56  ;;  %v1532_v60 = vpop.f32.mrb[3].mxu0  ;;  %v1379_v55 = vld [vmem:[%s309_s7] ss:$0 sm:$0xff]  ;;  %s1959_s7 = sshll.u32 %s2037_s15, 4  ;;  %s1960_s7 = int_to_ptr.vmem [resolvable:$false] %s1959_s7 }
 0x182   : > { %324 = vbcast.lane.b32.xlu0 %v1379_v55, 256  ;;  %s1961_s30 = scalar_lea.vmem %s1960_s7, 512  ;;  %p1962_p9 = scmp.lt.s32.totalorder %s2361_s17, %s1960_s7 }
 0x183   : > { %1534 = vmatpush3.xpose.msra.mxu0 %v587_v59  ;;  %p1963_p12 = scmp.lt.s32.totalorder %s1961_s30, %s1955_s8 }
 0x184   : > { %1671 = vmatprep.subr.bf16.mxu0 %v2034_v0 }
 0x185   : > { %p1964_p2 = por %p1963_p12, %p1962_p9 }
 0x186   : > { %1536 = vmatmul.mubr.f32.vlgmr.msra.gmra.mrb[4].mxu0 %v587_v59  ;;  %v1369_v59 = vld [vmem:[%s2406_s3 + $0x3] ss:$0 sm:$0xff] }
 0x187   : > { %1673 = vmatpush3.bf16.msra.mxu0 %v1672_v61  ;;  %1570 = vmatprep.mubr.msk.f32.mxu0 %vm2035_vm0, %v2036_v1  ;;  %p1965_p13 = pnand %p1964_p2, %p1958_p5 }
 0x188   : > { %1674 = vmatprep.subr.bf16.mxu0 %v2034_v0 }
 0x18b   : > { %1676 = vmatpush3.bf16.msra.mxu0 %v1675_v2  ;;  %v315_v2 = vand.u32 127, %v312_v62  ;;  %v1105_v62 = vld [vmem:[#allocation7 + $0xe0] sm:$0xff] }
 0x18c   : > { %1677 = vmatprep.subr.bf16.mxu0 %v2034_v0 }
 0x18d   : > { %vm316_vm1 = vcmp.ne.s32.totalorder %v2336_v63, %v315_v2  ;;  %v1107_v2 = vld [vmem:[#allocation7 + $0xf0] sm:$0xff] }
 0x18f   : > { %1679 = vmatpush3.bf16.msra.mxu0 %v1678_v5  ;;  %v1365_v5 = vsel %vm316_vm1, 1.0, %v2036_v1 }
 0x190   : > { %1680 = vmatprep.subr.bf16.mxu0 %v2034_v0 }
 0x193   : > { %1682 = vmatpush3.bf16.msra.mxu0 %v1681_v8 }
 0x194   : > { %1683 = vmatprep.subr.bf16.mxu0 %v2034_v0 }
 0x197   : > { %1685 = vmatpush3.bf16.msra.mxu0 %v1684_v11 }
 0x198   : > { %1686 = vmatprep.subr.bf16.mxu0 %v2034_v0 }
 0x19b   : > { %1688 = vmatpush3.bf16.msra.mxu0 %v1687_v14 }
 0x19c   : > { %1689 = vmatprep.subr.bf16.mxu0 %v2034_v0 }
 0x19f   : > { %1691 = vmatpush3.bf16.msra.mxu0 %v1690_v17 }
 0x1a0   : > { %1692 = vmatprep.subr.bf16.mxu0 %v2034_v0 }
 0x1a3   : > { %1694 = vmatpush3.bf16.msra.mxu0 %v1693_v20 }
 0x1a4   : > { %1613 = vmatprep.subr.mxu0 %v2036_v1 }
 0x1a6   : > { %1571 = vmatmul.mubr.f32.vlgmr.msra.gmra.mrb[6].mxu0 %v2270_v28 }
 0x1a7   : > { %1615 = vmatprep.mubr.msk.f32.mxu0 %vm2035_vm0, %v2036_v1 }
 0x1f4   : > { %v325_v3 = vpop.permute.xlu0 %324 }
 0x1f5   : > { %v332_v4 = vmul.f32 %v1379_v55, %v325_v3  ;;  %v1110_v3 = vld [vmem:[#allocation7 + $0x108] sm:$0xff] }
 0x1f7   : > { %v333_v6 = vmul.f32 %v1365_v5, %v332_v4  ;;  %v1112_v4 = vld [vmem:[#allocation7 + $0x118] sm:$0xff]  ;;  %v1749_v5 = vpack.c.bf16 %v1107_v2, %v1105_v62 }
 0x239   : > { %v493_v21 = vpop.f32.mrb[0].mxu1 }
 0x23a   : > { %v1497_v22 = vpop.f32.mrb[1].mxu1 }
 0x23b   : > { %v1082_v22 = vld [vmem:[#allocation7 + $0x28] sm:$0xff] }
 0x259   : > { %v656_v23 = vpop.f32.mrb[4].mxu0 }
 0x25a   : > { %v660_v24 = vmax.f32 %v493_v21, %v656_v23  ;;  %v1537_v25 = vpop.f32.mrb[5].mxu0  ;;  %v1079_v21 = vld [vmem:[#allocation7 + $0x10] sm:$0xff]  ;;  %v1084_v23 = vld [vmem:[#allocation7 + $0x38] sm:$0xff] }
 0x25b   : > { %v1723_v25 = vpack.c.bf16 %v1084_v23, %v1082_v22  ;;  %v1124_v22 = vld [vmem:[#allocation7 + $0x178] sm:$0xff] }
 0x279   : > { %v750_v27 = vpop.f32.mrb[6].mxu0 }
 0x27a   : > { %v751_v31 = vadd.f32 %v1368_v26, %v750_v27  ;;  %v1572_v32 = vpop.f32.mrb[7].mxu0  ;;  %v1081_v26 = vld [vmem:[#allocation7 + $0x20] sm:$0xff]  ;;  %v1083_v27 = vld [vmem:[#allocation7 + $0x30] sm:$0xff] }
 0x27b   : > { %v1727_v32 = vpack.c.bf16 %v1088_v30, %v1086_v29  ;;  %v1128_v29 = vld [vmem:[#allocation7 + $0x198] sm:$0xff] }
 0x27c   : > { %1574 = vmatpush3.xpose.msra.mxu1 %v751_v31 }
 0x27d   : > { %1695 = vmatprep.subr.bf16.mxu1 %v2034_v0 }
 0x27f   : > { %1576 = vmatmul.mubr.f32.vlgmr.msra.gmra.mrb[2].mxu1 %v751_v31  ;;  %v1725_v31 = vpack.c.bf16 %v1083_v27, %v1081_v26  ;;  %v1123_v26 = vld [vmem:[#allocation7 + $0x170] sm:$0xff]  ;;  %v1126_v27 = vld [vmem:[#allocation7 + $0x188] sm:$0xff] }
 0x280   : > { %1697 = vmatpush3.bf16.msra.mxu1 %v1696_v33  ;;  %1610 = vmatprep.mubr.msk.f32.mxu1 %vm2035_vm0, %v2036_v1  ;;  %v1085_v33 = vld [vmem:[#allocation7 + $0x40] sm:$0xff] }
 0x281   : > { %1698 = vmatprep.subr.bf16.mxu1 %v2034_v0  ;;  %v1729_v37 = vpack.c.bf16 %v1087_v34, %v1085_v33  ;;  %v1127_v33 = vld [vmem:[#allocation7 + $0x190] sm:$0xff]  ;;  %v1130_v34 = vld [vmem:[#allocation7 + $0x1a8] sm:$0xff] }
 0x284   : > { %1700 = vmatpush3.bf16.msra.mxu1 %v1699_v36  ;;  %v1092_v36 = vld [vmem:[#allocation7 + $0x78] sm:$0xff] }
 0x285   : > { %1701 = vmatprep.subr.bf16.mxu1 %v2034_v0  ;;  %v1731_v38 = vpack.c.bf16 %v1092_v36, %v1090_v35  ;;  %v1132_v35 = vld [vmem:[#allocation7 + $0x1b8] sm:$0xff] }
 0x288   : > { %1703 = vmatpush3.bf16.msra.mxu1 %v1702_v39  ;;  %v1089_v39 = vld [vmem:[#allocation7 + $0x60] sm:$0xff] }
 0x289   : > { %1704 = vmatprep.subr.bf16.mxu1 %v2034_v0  ;;  %v1733_v43 = vpack.c.bf16 %v1091_v40, %v1089_v39  ;;  %v1131_v39 = vld [vmem:[#allocation7 + $0x1b0] sm:$0xff]  ;;  %v1134_v40 = vld [vmem:[#allocation7 + $0x1c8] sm:$0xff] }
 0x28c   : > { %1706 = vmatpush3.bf16.msra.mxu1 %v1705_v42  ;;  %v1096_v42 = vld [vmem:[#allocation7 + $0x98] sm:$0xff] }
 0x28d   : > { %1707 = vmatprep.subr.bf16.mxu1 %v2034_v0  ;;  %v1735_v44 = vpack.c.bf16 %v1096_v42, %v1094_v41  ;;  %v1136_v41 = vld [vmem:[#allocation7 + $0x1d8] sm:$0xff] }
 0x290   : > { %1709 = vmatpush3.bf16.msra.mxu1 %v1708_v45  ;;  %v1093_v45 = vld [vmem:[#allocation7 + $0x80] sm:$0xff] }
 0x291   : > { %1710 = vmatprep.subr.bf16.mxu1 %v2034_v0  ;;  %v1737_v49 = vpack.c.bf16 %v1095_v46, %v1093_v45  ;;  %v1135_v45 = vld [vmem:[#allocation7 + $0x1d0] sm:$0xff]  ;;  %v1138_v46 = vld [vmem:[#allocation7 + $0x1e8] sm:$0xff] }
 0x294   : > { %1712 = vmatpush3.bf16.msra.mxu1 %v1711_v48  ;;  %v1100_v48 = vld [vmem:[#allocation7 + $0xb8] sm:$0xff] }
 0x295   : > { %1713 = vmatprep.subr.bf16.mxu1 %v2034_v0  ;;  %v1739_v50 = vpack.c.bf16 %v1100_v48, %v1098_v47  ;;  %v1140_v47 = vld [vmem:[#allocation7 + $0x1f8] sm:$0xff] }
 0x298   : > { %1715 = vmatpush3.bf16.msra.mxu1 %v1714_v51  ;;  %v1097_v51 = vld [vmem:[#allocation7 + $0xa0] sm:$0xff] }
 0x299   : > { %1716 = vmatprep.subr.bf16.mxu1 %v2034_v0  ;;  %v1741_v55 = vpack.c.bf16 %v1099_v52, %v1097_v51  ;;  %v1139_v51 = vld [vmem:[#allocation7 + $0x1f0] sm:$0xff] }
 0x29c   : > { %1718 = vmatpush3.bf16.msra.mxu1 %v1717_v54  ;;  %v1104_v54 = vld [vmem:[#allocation7 + $0xd8] sm:$0xff] }
 0x29f   : > { %1611 = vmatmul.mubr.f32.vlgmr.msra.gmra.mrb[4].mxu1 %v2270_v28 }
 0x352   : > { %v820_v56 = vpop.f32.mrb[2].mxu1 }
 0x353   : > { %v824_v57 = vmax.f32 %v660_v24, %v820_v56  ;;  %v1577_v58 = vpop.f32.mrb[3].mxu1  ;;  %v1721_v24 = vpack.c.bf16 %v1079_v21, %v1077_v19  ;;  %v1743_v56 = vpack.c.bf16 %v1104_v54, %v1102_v53  ;;  %v1117_v19 = vld [vmem:[#allocation7 + $0x140] sm:$0xff]  ;;  %v1122_v21 = vld [vmem:[#allocation7 + $0x168] sm:$0xff] }
 0x354   : > { %v1103_v58 = vld [vmem:[#allocation7 + $0xd0] sm:$0xff] }
 0x372   : > { %v914_v60 = vpop.f32.mrb[4].mxu1 }
 0x373   : > { %v915_v0 = vadd.f32 %v1369_v59, %v914_v60  ;;  %v1612_v61 = vpop.f32.mrb[5].mxu1  ;;  %v1106_v59 = vld [vmem:[#allocation7 + $0xe8] sm:$0xff]  ;;  %v1108_v60 = vld [vmem:[#allocation7 + $0xf8] sm:$0xff] }
 0x374   : > { %v1747_v61 = vpack.c.bf16 %v1108_v60, %v1106_v59  ;;  %v321_v59 = vsub.s32 0, %v2336_v63  ;;  %v1141_v60 = vld [vmem:[%s2408_s5] sm:$0x3] }
 0x375   : > { %1614 = vmatpush3.xpose.msra.mxu0 %v915_v0 }
 0x376   : > { %1618 = vmatprep.subr.mxu0 %v2036_v1 }
 0x378   : > { %1616 = vmatmul.mubr.f32.vlgmr.msra.gmra.mrb[8].mxu0 %v915_v0 }
 0x379   : > { %1619 = vmatpush3.msra.mxu0 %v2270_v28  ;;  %1620 = vmatprep.mubr.msk.f32.mxu0 %vm2035_vm0, %v2036_v1  ;;  %v1078_v1 = vld [vmem:[#allocation7 + $0x8] sm:$0xff] }
 0x37a   : > { %v1719_v20 = vpack.c.bf16 %v1080_v18, %v1078_v1 }
 0x37c   : > { %1720 = vmatprep.subr.bf16.mxu1 %v1719_v20  ;;  %v1119_v20 = vld [vmem:[#allocation7 + $0x150] sm:$0xff] }
 0x37d   : > { %1722 = vmatpush1.bf16.msra.mxu1 %v1721_v24  ;;  %v1761_v23 = vpack.c.bf16 %v1119_v20, %v1117_v19  ;;  %v1763_v24 = vpack.c.bf16 %v1124_v22, %v1122_v21 }
 0x37e   : > { %1724 = vmatprep.subr.bf16.mxu1 %v1723_v25  ;;  %v1121_v25 = vld [vmem:[#allocation7 + $0x160] sm:$0xff] }
 0x37f   : > { %v1765_v30 = vpack.c.bf16 %v1123_v26, %v1121_v25 }
 0x381   : > { %1726 = vmatpush1.bf16.msra.mxu1 %v1725_v31  ;;  %v1767_v31 = vpack.c.bf16 %v1128_v29, %v1126_v27 }
 0x382   : > { %1728 = vmatprep.subr.bf16.mxu1 %v1727_v32  ;;  %v1125_v32 = vld [vmem:[#allocation7 + $0x180] sm:$0xff] }
 0x383   : > { %v1769_v36 = vpack.c.bf16 %v1127_v33, %v1125_v32 }
 0x385   : > { %1730 = vmatpush1.bf16.msra.mxu1 %v1729_v37  ;;  %v1771_v37 = vpack.c.bf16 %v1132_v35, %v1130_v34 }
 0x386   : > { %1732 = vmatprep.subr.bf16.mxu1 %v1731_v38  ;;  %v1129_v38 = vld [vmem:[#allocation7 + $0x1a0] sm:$0xff] }
 0x387   : > { %v1773_v42 = vpack.c.bf16 %v1131_v39, %v1129_v38 }
 0x389   : > { %1734 = vmatpush1.bf16.msra.mxu1 %v1733_v43  ;;  %v1775_v43 = vpack.c.bf16 %v1136_v41, %v1134_v40 }
 0x38a   : > { %1736 = vmatprep.subr.bf16.mxu1 %v1735_v44  ;;  %v1133_v44 = vld [vmem:[#allocation7 + $0x1c0] sm:$0xff] }
 0x38b   : > { %v1777_v48 = vpack.c.bf16 %v1135_v45, %v1133_v44 }
 0x38d   : > { %1738 = vmatpush1.bf16.msra.mxu1 %v1737_v49  ;;  %v1779_v49 = vpack.c.bf16 %v1140_v47, %v1138_v46 }
 0x38e   : > { %1740 = vmatprep.subr.bf16.mxu1 %v1739_v50  ;;  %v1137_v50 = vld [vmem:[#allocation7 + $0x1e0] sm:$0xff] }
 0x38f   : > { %v1781_v52 = vpack.c.bf16 %v1139_v51, %v1137_v50 }
 0x391   : > { %1742 = vmatpush1.bf16.msra.mxu1 %v1741_v55 }
 0x392   : > { %1744 = vmatprep.subr.bf16.mxu1 %v1743_v56 }
 0x44b   : > { %v984_v7 = vpop.f32.mrb[8].mxu0 }
 0x44c   : > { %v988_v8 = vmax.f32 %v824_v57, %v984_v7  ;;  %v1617_v9 = vpop.f32.mrb[9].mxu0  ;;  %v1101_v57 = vld [vmem:[#allocation7 + $0xc0] sm:$0xff] }
 0x44d   : > { %v1745_v0 = vpack.c.bf16 %v1103_v58, %v1101_v57  ;;  %v1109_v7 = vld [vmem:[#allocation7 + $0x100] sm:$0xff]  ;;  %v1114_v9 = vld [vmem:[#allocation7 + $0x128] sm:$0xff] }
 0x44e   : > { %v989_v10 = vmul.f32 %v988_v8, %v333_v6  ;;  %v1111_v8 = vld [vmem:[#allocation7 + $0x110] sm:$0xff] }
 0x44f   : > { %1746 = vmatpush1.bf16.msra.mxu1 %v1745_v0  ;;  %v1149_v0 = vsub.s32 1, %v2336_v63 }
 0x450   : > { %v991_v11 = vsel %vm990_vm2, %v989_v10, -inf  ;;  %1748 = vmatprep.subr.bf16.mxu1 %v1747_v61  ;;  %v1146_v61 = vrot.slane %v1141_v60, %v321_v59 }
 0x451   : > { %992 = vmax.xlane.f32.xlu0 %v991_v11  ;;  %v1753_v11 = vpack.c.bf16 %v1111_v8, %v1109_v7  ;;  %v1150_v62 = vrot.slane %v1141_v60, %v1149_v0 }
 0x453   : > { %1750 = vmatpush1.bf16.msra.mxu1 %v1749_v5 }
 0x4de   : > { %v993_v12 = vpop.xlane.xlu0 %992 }
 0x4df   : > { %v994_v13 = vsub.f32 %v989_v10, %v993_v12  ;;  %v1116_v10 = vld [vmem:[#allocation7 + $0x138] sm:$0xff] }
 0x4e0   : > { %v1755_v12 = vpack.c.bf16 %v1116_v10, %v1114_v9 }
 0x4e1   : > { %v995_v14 = vmul.f32 1.442695, %v994_v13  ;;  %v1113_v13 = vld [vmem:[#allocation7 + $0x120] sm:$0xff] }
 0x4e3   : > { %1857 = vpow2.f32 %v995_v14  ;;  %v1115_v14 = vld [vmem:[#allocation7 + $0x130] sm:$0xff] }
 0x4e4   : > { %v1757_v1 = vpack.c.bf16 %v1115_v14, %v1113_v13 }
 0x4ed   : > { %v1858_v15 = vpop.eup %1857 }
 0x4ee   : > { %v2341_v16 = vmul.f32 %v1858_v15, %v333_v6  ;;  %v1751_v6 = vpack.c.bf16 %v1112_v4, %v1110_v3  ;;  %v1118_v15 = vld [vmem:[#allocation7 + $0x148] sm:$0xff] }
 0x4f0   : > { %v998_v17 = vsel %vm990_vm2, %v2341_v16, 0.0  ;;  %1752 = vmatprep.subr.bf16.mxu1 %v1751_v6 }
 0x4f1   : > { %999 = vadd.xlane.f32.xlu1 %v998_v17  ;;  %v1120_v17 = vld [vmem:[#allocation7 + $0x158] sm:$0xff]  ;;  %1754 = vmatpush1.bf16.msra.mxu1 %v1753_v11 }
 0x4f2   : > { %1756 = vmatprep.subr.bf16.mxu1 %v1755_v12  ;;  %v1759_v18 = vpack.c.bf16 %v1120_v17, %v1118_v15 }
 0x4f5   : > { %1758 = vmatpush1.bf16.msra.mxu1 %v1757_v1 }
 0x4f6   : > { %1760 = vmatprep.subr.bf16.mxu1 %v1759_v18 }
 0x4f9   : > { %1762 = vmatpush1.bf16.msra.mxu1 %v1761_v23 }
 0x4fa   : > { %1764 = vmatprep.subr.bf16.mxu1 %v1763_v24 }
 0x4fd   : > { %1766 = vmatpush1.bf16.msra.mxu1 %v1765_v30 }
 0x4fe   : > { %1768 = vmatprep.subr.bf16.mxu1 %v1767_v31 }
 0x501   : > { %1770 = vmatpush1.bf16.msra.mxu1 %v1769_v36 }
 0x502   : > { %1772 = vmatprep.subr.bf16.mxu1 %v1771_v37 }
 0x505   : > { %1774 = vmatpush1.bf16.msra.mxu1 %v1773_v42 }
 0x506   : > { %1776 = vmatprep.subr.bf16.mxu1 %v1775_v43 }
 0x509   : > { %1778 = vmatpush1.bf16.msra.mxu1 %v1777_v48 }
 0x50a   : > { %1780 = vmatprep.subr.bf16.mxu1 %v1779_v49 }
 0x50d   : > { %1782 = vmatpush1.bf16.msra.mxu1 %v1781_v52 }
 0x57e   : > { %v1000_v53 = vpop.xlane.xlu1 %999 }
 0x57f   : > { %v1001_v54 = vadd.f32 1e-13, %v1000_v53 }
 0x581   : > { %1859 = vrcp.f32 %v1001_v54 }
 0x58b   : > { %v1860_v55 = vpop.eup %1859 }
 0x58c   : > { %v1003_v56 = vmul.f32 %v1860_v55, %v2341_v16 }
 0x58e   : > { %1621 = vmatmul.mubr.msk.f32.vlgmr.msra.gmra.mrb[10].mxu0 %vm990_vm2, %v1003_v56 }
 0x661   : > { %v1073_v57 = vpop.f32.mrb[10].mxu0 }
 0x662   : > { %v1622_v58 = vpop.f32.mrb[11].mxu0  ;;  %1217 = vmatprep.mubr.f32.mxu1 %v1073_v57 }
 0x663   : > { %1218 = vmatmul.mubr.f32.vlgmr.msra.gmra.mrb[6].mxu1 %v2270_v28 }
 0x736   : > { %v1219_v16 = vpop.f32.mrb[6].mxu1 }
 0x737   : > { %v1220_v2 = vadd.f32 %v1219_v16, %v1146_v61  ;;  %v1221_v3 = vpop.f32.mrb[7].mxu1 }
 0x738   : > { %v1222_v4 = vadd.f32 %v1221_v3, %v1150_v62 }
 0x739   : > { %v1371_v5 = vmul.f32 -1.442695, %v1220_v2 }
 0x73a   : > { %v1372_v6 = vmul.f32 -1.442695, %v1222_v4 }
 0x73b   : > { %1861 = vpow2.f32 %v1371_v5 }
 0x73c   : > { %1863 = vpow2.f32 %v1372_v6 }
 0x745   : > { %v1862_v7 = vpop.eup %1861 }
 0x746   : > { %v1864_v8 = vpop.eup %1863  ;;  %v1230_v9 = vadd.f32 1.0, %v1862_v7 }
 0x747   : > { %v1231_v10 = vadd.f32 1.0, %v1864_v8 }
 0x748   : > { %1865 = vrcp.f32 %v1230_v9 }
 0x749   : > { %1867 = vrcp.f32 %v1231_v10 }
 0x752   : > { %v1866_v63 = vpop.eup %1865 }
 0x753   : > { %v1868_v11 = vpop.eup %1867  ;;  %v1236_v12 = vmul.f32 %v1866_v63, %v2270_v28 }
 0x754   : > { %v1238_v13 = vmul.f32 %v1868_v11, %v1073_v57 }
 0x755   : > { %1237 = vst [vmem:[%s306_s16] sm:$0xff] %v1236_v12 }
 0x756   : > { %1239 = vst [vmem:[%s306_s16 + $0x8] sm:$0xff] %v1238_v13 }
 0x757   : > { %1968 = shalt.err (!%p1965_p13)
}
 0x758   : > { %s1969_s20 = scalar_lea.hbm %s2359_s14, 256  ;;  %s1973_s10 = scalar_lea.hbm %s2409_s6, 512 }
 0x759   : > { %p1970_p6 = scmp.ne.s32.totalorder %s2359_s14, %s1969_s20  ;;  %p1974_p7 = scmp.lt.u32.totalorder %s2359_s14, %s2409_s6 }
 0x75a   : > { %p1975_p8 = scmp.lt.u32.totalorder %s1973_s10, %s1969_s20  ;;  %p1977_p0 = scmp.lt.u32.totalorder %s1969_s20, %s2359_s14 }
 0x75b   : > { %p1971_p10 = pnand %p1970_p6, %p2423_p1 }
 0x75c   : > { %p1976_p11 = por %p1975_p8, %p1974_p7 }
 0x75d   : > { %p1972_p4 = pneg %p1971_p10 }
 0x75e   : > { %p1978_p3 = por %p1977_p0, %p1976_p11 }
 0x760   : > { %p1979_p5 = pnand %p1978_p3, %p1972_p4 }
 0x762   : > { %1982 = shalt.err (!%p1979_p5)
}
 0x763   : > { %1793 = dma.vmem_to_hbm [thread:$0]  (%p2423_p1), %s2361_s17, 256, %s2359_s14, %s1241_s25  }
 0x764 PF: > { %s1267_s16 = sand.u32 1, %s2013_s21   ;;  %p2424_p9 = scmp.ne.s32.totalorder %s2414_s28, 0 }
 0x765   : > { %p2425_p12 = scmp.ge.s32.totalorder %s2025_s24, 2  ;;  %s1268_s18 = scalar_lea.sflag [#allocation4], %s1267_s16 }
 0x767   : > { %p1807_p2 = pnand %p2425_p12, %p2424_p9 }
 0x769   : > { %2008 = dma.done.wait (!%p1807_p2), %s1268_s18, 256  }
 0x76a   : > { %2010 = vsyncadd (!%p1807_p2), %s1268_s18, 4294967040  ;;  %p20_p13 = scmp.ge.s32.totalorder %s2183_s26, 4   ;;  %s2426_s21 = smov %s2017_s22 }
 0x76b   : > { %s2427_s22 = smov %s2021_s23  ;;  %s2428_s23 = smov %s2192_s11 }
 0x76c   : > { %s2429_s24 = smov %s2183_s26  ;;  %22 = sbr.rel (!%p20_p13) target bundleno = 6 (0x6), region = 100 }
 0x773   :  { %1273 = vsyncpa [#allocation3], 1 }
 0x774   :  { %1275 = vsyncpa [#allocation3 + $0x1], 1 }
 0x775   :  { %1276 = vsyncpa [#allocation6], 1 }
 0x776   :  { %1277 = vsyncpa [#allocation4], 1 }
 0x777   :  { %1279 = vsyncpa [#allocation4 + $0x1], 1 }

</bundles_post_ra>
